<compile_context>
chip_gen: v7x
topology: tpu7x:2x2x1
jax: 0.10.0
libtpu: 0.0.40
codegen_flags: <defaults>
</compile_context>

<pallas_src>
import functools

import jax
import jax.numpy as jnp
from jax import lax
from jax.experimental import pallas as pl
from jax.experimental.pallas import tpu as pltpu

_MB = 1024 * 1024


def _vmem_capacity_bytes(default=64 * _MB):
    """Physical VMEM of the local TPU; conservative fallback if unavailable."""
    try:
        return int(pltpu.get_tpu_info().vmem_capacity_bytes)
    except Exception:
        return default


# ----------------------------------------------------------------------------
# Kernel 1: fused (scaled-)Q / K / V projection, batch-major lane-dense output.
# K is written pre-transposed as (N, E, L).
# ----------------------------------------------------------------------------
def _qkv_proj_kernel(x_ref, w_ref, b_ref, q_ref, kt_ref, v_ref, *, E, cdt):
    x = x_ref[0]                                               # (TM, E) cdt
    y = lax.dot_general(x, w_ref[...], (((1,), (0,)), ((), ())),
                        preferred_element_type=jnp.float32)
    y = y + b_ref[...]                                         # (TM, 3E) f32
    q_ref[0] = y[:, :E].astype(cdt)           # q already scaled (folded into w)
    kt_ref[0] = y[:, E:2 * E].T.astype(cdt)   # one transpose here, none later
    v_ref[0] = y[:, 2 * E:].astype(cdt)


def fused_qkv_projection(feature_b, w_qkv_t, b_qkv, *, out_dtype, tm,
                         vmem_limit_bytes):
    """feature_b: (N, L, E); w_qkv_t: (E, 3E) pre-transposed; b_qkv: (1, 3E)."""
    N, L, E = feature_b.shape
    TM = min(L, tm)
    grid = (N, pl.cdiv(L, TM))
    x_spec = pl.BlockSpec((1, TM, E), lambda n, m: (n, m, 0))
    w_spec = pl.BlockSpec((E, 3 * E), lambda n, m: (0, 0))      # VMEM-resident
    b_spec = pl.BlockSpec((1, 3 * E), lambda n, m: (0, 0))
    q_spec = pl.BlockSpec((1, TM, E), lambda n, m: (n, m, 0))
    kt_spec = pl.BlockSpec((1, E, TM), lambda n, m: (n, 0, m))
    v_spec = pl.BlockSpec((1, TM, E), lambda n, m: (n, m, 0))
    qv_sds = jax.ShapeDtypeStruct((N, L, E), out_dtype)
    kt_sds = jax.ShapeDtypeStruct((N, E, L), out_dtype)
    return pl.pallas_call(
        functools.partial(_qkv_proj_kernel, E=E, cdt=out_dtype),
        grid=grid,
        in_specs=[x_spec, w_spec, b_spec],
        out_specs=(q_spec, kt_spec, v_spec),
        out_shape=(qv_sds, kt_sds, qv_sds),
        compiler_params=pltpu.CompilerParams(
            dimension_semantics=("parallel", "parallel"),
            vmem_limit_bytes=vmem_limit_bytes),
    )(feature_b, w_qkv_t, b_qkv)


# ----------------------------------------------------------------------------
# Kernel 2: attention (low-rank rel-pos) + fused output projection
# ----------------------------------------------------------------------------
def _attn_kernel(q_ref, kt_ref, v_ref, pos_ref, wpos_ref, wo_ref, bo_ref,
                 out_ref, w_ref=None, *, H, Dh, P, mxu_dtype):
    q = q_ref[0]                                    # (TQ, E)  mxu_dtype
    kt = kt_ref[0]                                  # (E, L)   pre-transposed
    v = v_ref[0]                                    # (L, E)
    wo_t = wo_ref[...]                              # (E, E)
    TQ, E = q.shape
    L = kt.shape[1]

    # Low-rank fold of the relative-position projection onto the query side:
    #   qpb[:, h*P + p] = sum_d q[:, h*Dh+d] * wp[h*Dh+d, p]
    #   qpb[:, H*P + h] = sum_d q[:, h*Dh+d] * bp[h*Dh+d]
    qpb = lax.dot_general(q, wpos_ref[...], (((1,), (0,)), ((), ())),
                          preferred_element_type=jnp.float32)  # (TQ, H*P+H)

    # Relative-position scores for ALL heads in one pass over the pos block.
    # pos block is (P, TQ, L): key axis lane-minor, query axis on sublanes;
    # each (TQ, L) slice is read once and FMA'd into every head accumulator.
    sb = [jnp.zeros((TQ, L), jnp.float32) for _ in range(H)]
    for p in range(P):                               # static unroll, P is tiny
        pos_p = pos_ref[0, p].astype(jnp.float32)    # (TQ, L), contiguous tile
        for h in range(H):
            sb[h] = sb[h] + qpb[:, h * P + p:h * P + p + 1] * pos_p

    # Approx EUP reciprocal only on the bf16 fast path without a weights
    # output; exact reciprocal when the averaged attention weights are
    # returned so their rows sum to 1 up to rounding.
    approx = (jnp.dtype(mxu_dtype) != jnp.dtype(jnp.float32)) and (w_ref is None)

    o_parts = []
    if w_ref is not None:
        w_acc = jnp.zeros((TQ, L), jnp.float32)
    for h in range(H):                               # static unroll, H is small
        sl = slice(h * Dh, (h + 1) * Dh)
        # content-content scores on the MXU; kt consumed in stored layout.
        s = lax.dot_general(q[:, sl], kt[sl, :], (((1,), (0,)), ((), ())),
                            preferred_element_type=jnp.float32)      # (TQ, L)
        s = s + sb[h] + qpb[:, H * P + h:H * P + h + 1]
        # softmax in f32
        s = s - jnp.max(s, axis=-1, keepdims=True)
        e = jnp.exp(s)
        w_h = e * pl.reciprocal(jnp.sum(e, axis=-1, keepdims=True), approx=approx)
        # P @ V on the MXU; o_h fills its own column slice of the head output.
        o_parts.append(lax.dot_general(w_h.astype(mxu_dtype), v[:, sl],
                                       (((1,), (0,)), ((), ())),
                                       preferred_element_type=jnp.float32))
        if w_ref is not None:
            w_acc = w_acc + w_h

    # Single full-depth (K = E) output projection: fills the MXU, H x fewer
    # pushes, and attn_output never round-trips HBM.
    attn = jnp.concatenate(o_parts, axis=-1).astype(mxu_dtype)        # (TQ, E)
    out = lax.dot_general(attn, wo_t, (((1,), (0,)), ((), ())),
                          preferred_element_type=jnp.float32) + bo_ref[...]
    out_ref[0] = out.astype(out_ref.dtype)
    if w_ref is not None:
        w_ref[0] = (w_acc * (1.0 / H)).astype(w_ref.dtype)


def _pick_query_tile(L, E, P, H, need_weights, act_bytes, out_bytes, w_bytes,
                     budget_bytes):
    """Largest TQ whose per-step VMEM (pipelined buffers + f32 temps) fits."""
    for tq in (256, 128, 64, 32, 16, 8):
        t = min(tq, L)
        stream = 2 * t * P * L * act_bytes             # pos (double-buffered)
        stream += 2 * t * E * act_bytes                 # q
        stream += 2 * 2 * E * L * act_bytes             # k^T, v
        stream += 2 * t * E * out_bytes                 # out
        if need_weights:
            stream += 2 * t * L * w_bytes
        resident = (E * (H * P + H) + E * E + E) * act_bytes
        temps = (H + 6) * t * L * 4 + 4 * t * E * 4     # sb / s / e / o_parts
        if stream + resident + temps <= budget_bytes or tq == 8:
            return t
    return min(8, L)


def attention_core(q, kt, v, pos_t, w_pos_t, wo_t, bo, *, H, Dh, need_weights,
                   out_dtype, w_dtype, tq, vmem_limit_bytes):
    N, L, E = q.shape
    P = pos_t.shape[1]
    TQ = min(tq, L)
    grid = (N, pl.cdiv(L, TQ))

    q_spec = pl.BlockSpec((1, TQ, E), lambda n, t: (n, t, 0))
    kt_spec = pl.BlockSpec((1, E, L), lambda n, t: (n, 0, 0))
    v_spec = pl.BlockSpec((1, L, E), lambda n, t: (n, 0, 0))
    pos_spec = pl.BlockSpec((1, P, TQ, L), lambda n, t: (n, 0, t, 0))
    wpos_spec = pl.BlockSpec(w_pos_t.shape, lambda n, t: (0, 0))   # resident
    wo_spec = pl.BlockSpec(wo_t.shape, lambda n, t: (0, 0))        # resident
    bo_spec = pl.BlockSpec((1, E), lambda n, t: (0, 0))            # resident

    out_specs = [pl.BlockSpec((1, TQ, E), lambda n, t: (n, t, 0))]
    out_shape = [jax.ShapeDtypeStruct((N, L, E), out_dtype)]
    if need_weights:
        out_specs.append(pl.BlockSpec((1, TQ, L), lambda n, t: (n, t, 0)))
        out_shape.append(jax.ShapeDtypeStruct((N, L, L), w_dtype))

    outs = pl.pallas_call(
        functools.partial(_attn_kernel, H=H, Dh=Dh, P=P, mxu_dtype=q.dtype),
        grid=grid,
        in_specs=[q_spec, kt_spec, v_spec, pos_spec,
                  wpos_spec, wo_spec, bo_spec],
        out_specs=tuple(out_specs),
        out_shape=tuple(out_shape),
        compiler_params=pltpu.CompilerParams(
            dimension_semantics=("parallel", "parallel"),
            vmem_limit_bytes=vmem_limit_bytes),
    )(q, kt, v, pos_t, w_pos_t, wo_t, bo)
    if need_weights:
        return outs[0], outs[1]
    return outs[0], None


# ----------------------------------------------------------------------------
# Module forward (parameter folding in plain JAX; all activations via Pallas)
# ----------------------------------------------------------------------------
def mhsa_rel_pos_forward(feature, pos, params, num_heads, *,
                         need_weights=True, mxu_dtype=jnp.bfloat16,
                         tq=None, tm=None):
    L, N, E = feature.shape
    H = num_heads
    Dh = E // H
    P = pos.shape[-1]
    scaling = float(Dh) ** (-0.5)
    cdt = jnp.dtype(mxu_dtype)
    out_dtype = cdt            # stream attention output in the compute dtype
    w_dtype = cdt              # and the averaged weights too

    # --- per-generation VMEM budgeting (v5e/v6e 128 MiB, v7x 64 MiB) --------
    vmem_cap = _vmem_capacity_bytes()
    vmem_limit = min(int(vmem_cap * 3 // 4), 96 * _MB)
    if tm is None:
        tm = 512 if vmem_cap >= 100 * _MB else 256
    if tq is None:
        tq = _pick_query_tile(L, E, P, H, need_weights, cdt.itemsize,
                              jnp.dtype(out_dtype).itemsize,
                              jnp.dtype(w_dtype).itemsize,
                              budget_bytes=int(vmem_limit * 0.6))

    # --- trace-time parameter folding (tiny tensors, done once) -------------
    w_qkv_t = jnp.concatenate(
        [params["wq"] * scaling, params["wk"], params["wv"]], axis=0).T  # (E,3E)
    b_qkv = jnp.concatenate(
        [params["bq"] * scaling, params["bk"], params["bv"]]).reshape(1, 3 * E)
    # block-diagonal fold of wp/bp so qp/qb come out of ONE small matmul:
    eye_h = jnp.eye(H, dtype=jnp.float32)
    wpd = (params["wp"].reshape(H, Dh, P)[:, :, None, :]
           * eye_h[:, None, :, None]).reshape(E, H * P)
    bpd = (params["bp"].reshape(H, Dh)[:, :, None]
           * eye_h[:, None, :]).reshape(E, H)
    w_pos_t = jnp.concatenate([wpd, bpd], axis=1)                    # (E, H*P+H)
    wo_t = params["wo"].T                                            # (E, E)
    bo = params["bo"].reshape(1, E)

    # --- layout passes in the compute dtype (half the HBM bytes for bf16) ---
    feature_b = jnp.transpose(feature.astype(cdt), (1, 0, 2))        # (N, L, E)
    # pos re-layout (N,L,L,P) -> (N, P, Lq, Lk): key axis lane-minor, query
    # axis on sublanes, P a leading axis -> no 128/P lane padding in VMEM.
    pos_t = jnp.transpose(pos.astype(cdt), (0, 3, 1, 2))

    # --- Pallas kernels ------------------------------------------------------
    q, kt, v = fused_qkv_projection(
        feature_b, w_qkv_t.astype(cdt), b_qkv, out_dtype=cdt, tm=tm,
        vmem_limit_bytes=vmem_limit)
    out_b, w_avg = attention_core(
        q, kt, v, pos_t, w_pos_t.astype(cdt), wo_t.astype(cdt), bo,
        H=H, Dh=Dh, need_weights=need_weights, out_dtype=out_dtype,
        w_dtype=w_dtype, tq=tq, vmem_limit_bytes=vmem_limit)
    # output already narrow -> this transpose moves half the f32 bytes.
    out = jnp.transpose(out_b, (1, 0, 2))                            # (L, N, E)
    # TODO(synk): attn-weight dropout omitted (p=0.0 / eval -> identity);
    #             key_padding_mask / attn_mask unsupported (module asserts None).
    return out, w_avg


# ----------------------------------------------------------------------------
# Pure-JAX reference replicating the exact PyTorch forward (for verification)
# ----------------------------------------------------------------------------
def reference_forward(feature, pos, params, num_heads):
    L, N, E = feature.shape
    H = num_heads
    Dh = E // H
    scaling = float(Dh) ** (-0.5)
    q = feature @ params["wq"].T + params["bq"]
    k = feature @ params["wk"].T + params["bk"]
    v = feature @ params["wv"].T + params["bv"]
    p = pos @ params["wp"].T + params["bp"]                          # (N,L,L,E)
    p = jnp.transpose(p, (0, 2, 1, 3)).reshape(N, L * L, E)
    q = q * scaling
    q = q.reshape(L, N * H, Dh).transpose(1, 0, 2)
    k = k.reshape(L, N * H, Dh).transpose(1, 0, 2)
    v = v.reshape(L, N * H, Dh).transpose(1, 0, 2)
    p = jnp.transpose(p, (1, 0, 2)).reshape(L * L, N * H, Dh).transpose(1, 0, 2)
    a = jnp.einsum("bid,bjd->bij", q, k)
    rq = jnp.tile(q, (1, L, 1))
    b = jnp.sum(rq * p, axis=2).reshape(N * H, L, L).transpose(0, 2, 1)
    w = jax.nn.softmax(a + b, axis=-1)
    o = jnp.einsum("bij,bjd->bid", w, v)
    o = o.transpose(1, 0, 2).reshape(L, N, E)
    o = o @ params["wo"].T + params["bo"]
    return o, w.reshape(N, H, L, L).sum(axis=1) / H


# ----------------------------------------------------------------------------
if __name__ == "__main__":
    L, N, E, H, P = 8, 2, 32, 4, 4  # seq, batch, embed_dim, num_heads, pos_dim

    key = jax.random.PRNGKey(0)
    keys = jax.random.split(key, 8)

    def xavier(k, shape):
        fan_out, fan_in = shape
        a = (6.0 / (fan_in + fan_out)) ** 0.5
        return jax.random.uniform(k, shape, jnp.float32, -a, a)

    params = {
        "wq": xavier(keys[0], (E, E)), "bq": jnp.zeros((E,), jnp.float32),
        "wk": xavier(keys[1], (E, E)), "bk": jnp.zeros((E,), jnp.float32),
        "wv": xavier(keys[2], (E, E)), "bv": jnp.zeros((E,), jnp.float32),
        "wp": xavier(keys[3], (E, P)), "bp": jnp.zeros((E,), jnp.float32),
        "wo": xavier(keys[4], (E, E)), "bo": jnp.zeros((E,), jnp.float32),
    }

    feature = jax.random.normal(keys[5], (L, N, E), jnp.float32)      # (L, N, Es)
    pos = jax.random.normal(keys[6], (N, L, L, P), jnp.float32)       # (N, L, L, Ep)

    ref_out, ref_w = reference_forward(feature, pos, params, H)

    # exact-math path (f32 streams, exact reciprocal): tight check
    out32, w32 = mhsa_rel_pos_forward(feature, pos, params, H,
                                      need_weights=True, mxu_dtype=jnp.float32)
    out32 = jax.block_until_ready(out32)
    w32 = jax.block_until_ready(w32)
    assert out32.shape == (L, N, E) and w32.shape == (N, L, L)
    assert jnp.allclose(out32, ref_out, atol=1e-4, rtol=1e-4)
    assert jnp.allclose(w32, ref_w, atol=1e-5, rtol=1e-5)

    # fast path (bf16 HBM streams + bf16 outputs, f32 accumulation inside)
    out_bf, w_bf = mhsa_rel_pos_forward(feature, pos, params, H,
                                        need_weights=True, mxu_dtype=jnp.bfloat16)
    out_bf = jax.block_until_ready(out_bf)
    w_bf = jax.block_until_ready(w_bf)
    assert out_bf.dtype == jnp.bfloat16 and w_bf.dtype == jnp.bfloat16
    assert jnp.allclose(out_bf.astype(jnp.float32), ref_out, atol=1e-1, rtol=5e-2)
    assert jnp.allclose(w_bf.astype(jnp.float32), ref_w, atol=3e-2, rtol=3e-2)

    # need_weights=False variant: no weights accumulator / writeback at all
    out_nw, w_none = mhsa_rel_pos_forward(feature, pos, params, H,
                                          need_weights=False,
                                          mxu_dtype=jnp.bfloat16)
    out_nw = jax.block_until_ready(out_nw)
    assert w_none is None
    assert jnp.allclose(out_nw.astype(jnp.float32), ref_out, atol=1e-1, rtol=5e-2)

    print("KERNEL_OK")
</pallas_src>

<mosaic_0001>
module attributes {stable_mosaic.version = 11 : i64} {
  func.func @_qkv_proj_kernel(%arg0: i32, %arg1: i32, %arg2: memref<1x8x32xf32, #tpu.memory_space<vmem>>, %arg3: memref<32x96xf32, #tpu.memory_space<vmem>>, %arg4: memref<1x96xf32, #tpu.memory_space<vmem>>, %arg5: memref<1x8x32xf32, #tpu.memory_space<vmem>>, %arg6: memref<1x32x8xf32, #tpu.memory_space<vmem>>, %arg7: memref<1x8x32xf32, #tpu.memory_space<vmem>>) attributes {dimension_semantics = [#tpu.dimension_semantics<parallel>, #tpu.dimension_semantics<parallel>], iteration_bounds = array<i64: 2, 1>, scalar_prefetch = 0 : i64, scratch_operands = 0 : i64, tpu.core_type = #tpu.core_type<tc>, window_params = [{transform_indices = @transform_0, window_bounds = array<i64: 1, 8, 32>}, {pipeline_mode = #tpu.pipeline_mode<synchronous>, transform_indices = @transform_1, window_bounds = array<i64: 32, 96>}, {pipeline_mode = #tpu.pipeline_mode<synchronous>, transform_indices = @transform_2, window_bounds = array<i64: 1, 96>}, {transform_indices = @transform_3, window_bounds = array<i64: 1, 8, 32>}, {transform_indices = @transform_4, window_bounds = array<i64: 1, 32, 8>}, {transform_indices = @transform_5, window_bounds = array<i64: 1, 8, 32>}]} {
    %c0 = arith.constant 0 : index
    %c0_0 = arith.constant 0 : index
    %c0_1 = arith.constant 0 : index
    %0 = vector.load %arg2[%c0, %c0_0, %c0_1] : memref<1x8x32xf32, #tpu.memory_space<vmem>>, vector<1x8x32xf32>
    %1 = vector.shape_cast %0 : vector<1x8x32xf32> to vector<8x32xf32>
    %c0_2 = arith.constant 0 : index
    %c0_3 = arith.constant 0 : index
    %2 = vector.load %arg3[%c0_2, %c0_3] : memref<32x96xf32, #tpu.memory_space<vmem>>, vector<32x96xf32>
    %cst = arith.constant dense<0.000000e+00> : vector<8x96xf32>
    %3 = tpu.matmul %1, %2, %cst {dimension_numbers = #tpu.dot_dimension_numbers<[1], [0], [0], [1], [0, 0, 1, 1], [], []>} : vector<8x32xf32>, vector<32x96xf32>, vector<8x96xf32> -> vector<8x96xf32>
    %c0_4 = arith.constant 0 : index
    %c0_5 = arith.constant 0 : index
    %4 = vector.load %arg4[%c0_4, %c0_5] : memref<1x96xf32, #tpu.memory_space<vmem>>, vector<1x96xf32>
    %5 = vector.broadcast %4 : vector<1x96xf32> to vector<8x96xf32>
    %6 = arith.addf %3, %5 : vector<8x96xf32>
    %7 = vector.extract_strided_slice %6 {offsets = [0, 0], sizes = [8, 32], strides = [1, 1]} : vector<8x96xf32> to vector<8x32xf32>
    %c0_6 = arith.constant 0 : index
    %c0_7 = arith.constant 0 : index
    %c0_8 = arith.constant 0 : index
    %8 = vector.load %arg5[%c0_6, %c0_7, %c0_8] : memref<1x8x32xf32, #tpu.memory_space<vmem>>, vector<1x8x32xf32>
    %9 = vector.shape_cast %8 : vector<1x8x32xf32> to vector<8x32xf32>
    %10 = vector.shape_cast %7 : vector<8x32xf32> to vector<1x8x32xf32>
    tpu.vector_store %arg5[%c0_6, %c0_7, %c0_8], %10 {strides = array<i32>} : memref<1x8x32xf32, #tpu.memory_space<vmem>>, vector<1x8x32xf32>,
    %11 = vector.extract_strided_slice %6 {offsets = [0, 32], sizes = [8, 32], strides = [1, 1]} : vector<8x96xf32> to vector<8x32xf32>
    %12 = tpu.transpose %11, [1, 0] : vector<8x32xf32> -> vector<32x8xf32>
    %c0_9 = arith.constant 0 : index
    %c0_10 = arith.constant 0 : index
    %c0_11 = arith.constant 0 : index
    %13 = vector.load %arg6[%c0_9, %c0_10, %c0_11] : memref<1x32x8xf32, #tpu.memory_space<vmem>>, vector<1x32x8xf32>
    %14 = vector.shape_cast %13 : vector<1x32x8xf32> to vector<32x8xf32>
    %15 = vector.shape_cast %12 : vector<32x8xf32> to vector<1x32x8xf32>
    tpu.vector_store %arg6[%c0_9, %c0_10, %c0_11], %15 {strides = array<i32>} : memref<1x32x8xf32, #tpu.memory_space<vmem>>, vector<1x32x8xf32>,
    %16 = vector.extract_strided_slice %6 {offsets = [0, 64], sizes = [8, 32], strides = [1, 1]} : vector<8x96xf32> to vector<8x32xf32>
    %c0_12 = arith.constant 0 : index
    %c0_13 = arith.constant 0 : index
    %c0_14 = arith.constant 0 : index
    %17 = vector.load %arg7[%c0_12, %c0_13, %c0_14] : memref<1x8x32xf32, #tpu.memory_space<vmem>>, vector<1x8x32xf32>
    %18 = vector.shape_cast %17 : vector<1x8x32xf32> to vector<8x32xf32>
    %19 = vector.shape_cast %16 : vector<8x32xf32> to vector<1x8x32xf32>
    tpu.vector_store %arg7[%c0_12, %c0_13, %c0_14], %19 {strides = array<i32>} : memref<1x8x32xf32, #tpu.memory_space<vmem>>, vector<1x8x32xf32>,
    return
  }
  func.func @transform_0(%arg0: i32, %arg1: i32) -> (i32, i32, i32) {
    %c0_i32 = arith.constant 0 : i32
    %c0_i32_0 = arith.constant 0 : i32
    return %arg0, %arg1, %c0_i32 : i32, i32, i32
  }
  func.func @transform_1(%arg0: i32, %arg1: i32) -> (i32, i32) {
    %c0_i32 = arith.constant 0 : i32
    %c0_i32_0 = arith.constant 0 : i32
    %c0_i32_1 = arith.constant 0 : i32
    return %c0_i32, %c0_i32_0 : i32, i32
  }
  func.func @transform_2(%arg0: i32, %arg1: i32) -> (i32, i32) {
    %c0_i32 = arith.constant 0 : i32
    %c0_i32_0 = arith.constant 0 : i32
    %c0_i32_1 = arith.constant 0 : i32
    return %c0_i32, %c0_i32_0 : i32, i32
  }
  func.func @transform_3(%arg0: i32, %arg1: i32) -> (i32, i32, i32) {
    %c0_i32 = arith.constant 0 : i32
    %c0_i32_0 = arith.constant 0 : i32
    return %arg0, %arg1, %c0_i32 : i32, i32, i32
  }
  func.func @transform_4(%arg0: i32, %arg1: i32) -> (i32, i32, i32) {
    %c0_i32 = arith.constant 0 : i32
    %c0_i32_0 = arith.constant 0 : i32
    return %arg0, %c0_i32, %arg1 : i32, i32, i32
  }
  func.func @transform_5(%arg0: i32, %arg1: i32) -> (i32, i32, i32) {
    %c0_i32 = arith.constant 0 : i32
    %c0_i32_0 = arith.constant 0 : i32
    return %arg0, %arg1, %c0_i32 : i32, i32, i32
  }
}

</mosaic_0001>

<bundles_post_ra>
// kernel: tpu_custom_call.1
= control target key start
LH: loop header
LB: loop body
LE: loop exit
PB: predicated region body
PF: predicated region fallthrough
CT: control target
= control target key end

     0   :  { %s1245_s0 = inlined_call_operand.hbm [shape: f32[2,8,32], index: 0, kind: input, shape index: {}]   ;;  %s1246_s1 = inlined_call_operand.hbm [shape: f32[32,96], index: 1, kind: input, shape index: {}]   ;;  %s1247_s2 = inlined_call_operand.vmem [shape: f32[1,96], index: 2, kind: input, shape index: {}]   ;;  %s1248_s3 = inlined_call_operand.hbm [shape: f32[2,8,32], index: 3, kind: output, shape index: {0}]   ;;  %s1249_s4 = inlined_call_operand.vmem [shape: f32[2,32,8], index: 4, kind: output, shape index: {1}]   ;;  %s1250_s5 = inlined_call_operand.hbm [shape: f32[2,8,32], index: 5, kind: output, shape index: {2}]  }
   0x1   :  { %1255 = sst [smem:[#allocation14_spill]] %s1245_s0 }
   0x2   :  { %11 = vsyncpa [#allocation3], 0 }
   0x3   :  { %13 = vsyncpa [#allocation3 + $0x1], 0 }
   0x4   :  { %14 = vsyncpa [#allocation6], 0 }
   0x5   :  { %15 = vsyncpa [#allocation4], 0 }
   0x6   :  { %17 = vsyncpa [#allocation4 + $0x1], 0 }
   0x7   :  { %18 = vsyncpa [#allocation9], 0 }
   0x8   :  { %20 = vsyncpa [#allocation9 + $0x1], 0  ;;  %s990_s18 = smov 0   ;;  %s992_s19 = smov 0  }
   0x9   :  { %s994_s20 = smov 0   ;;  %s996_s21 = smov 0  }
   0xa   :  { %s998_s22 = smov 0   ;;  %s1000_s23 = smov 0  }
   0xb LB: > { %s641_s24 = sadd.s32 4294967295, %s947_s23   ;;  %s642_s25 = sadd.s32 4294967294, %s947_s23   ;;  %s947_s23 = sphi %s1000_s23, %s26_s23   ;;  %s943_s22 = sphi %s998_s22, %s1276_s22   ;;  %s939_s21 = sphi %s996_s21, %s1275_s21   ;;  %s935_s20 = sphi %s994_s20, %s1274_s20   ;;  %s931_s19 = sphi %s992_s19, %s1273_s19   ;;  %s927_s18 = sphi %s990_s18, %s1272_s18  }
   0xc   : > { %p60_p0 = scmp.ne.s32.totalorder %s931_s19, %s927_s18  ;;  %p1024_p1 = scmp.eq.s32.totalorder %s641_s24, 0 }
   0xd   : > { %p1028_p2 = scmp.eq.s32.totalorder %s641_s24, 1  ;;  %p134_p3 = scmp.eq.s32.totalorder %s642_s25, 1 }
   0xe   : > { %s1256_s26 = scalar_select %p1024_p1, 1, 0 }
   0xf   : > { %s1257_s27 = scalar_select %p1028_p2, 1, 0 }
  0x10   : > { %p1034_p4 = por %p1024_p1, %p60_p0  ;;  %p643_p5 = scmp.ge.s32.totalorder %s947_s23, 1 }
  0x11   : > { %p1039_p6 = por %p134_p3, %p60_p0  ;;  %p197_p7 = scmp.lt.s32.totalorder %s947_s23, 3 }
  0x12   : > { %s1258_s28 = scalar_select %p1034_p4, 1, 0 }
  0x13   : > { %s1259_s29 = scalar_select %p1039_p6, 1, 0 }
  0x14   : > { %p1044_p8 = pnand %p643_p5, %p197_p7  ;;  %s949_s6 = smov [#allocation5]  }
  0x15   : > { %s209_s7 = sshll.u32 %s949_s6, 4  ;;  %s38_s9 = sadd.s32 1, %s943_s22  ;;  %s210_s7 = int_to_ptr.vmem [resolvable:$true] %s209_s7 }
  0x16   : > { %s1260_s30 = scalar_select %p1044_p8, 1, 0 }
  0x17   : > { %p696_p9 = pneg %p1044_p8  ;;  %s771_s12 = scalar_lea.hbm %s1246_s1, 512 }
  0x18   : > { %p772_p12 = scmp.ne.s32.totalorder %s1246_s1, %s771_s12  ;;  %p778_p5 = scmp.lt.u32.totalorder %s771_s12, %s1246_s1 }
  0x19   : > { %p1053_p11 = pnand %p696_p9, %p1024_p1 }
  0x1b   : > { %p773_p13 = pneg %p1053_p11 }
  0x1d   : > { %p774_p0 = pnand %p773_p13, %p772_p12 }
  0x1f   : > { %p775_p3 = pneg %p774_p0 }
  0x21   : > { %p780_p7 = pnand %p778_p5, %p775_p3 }
  0x23   : > { %783 = shalt.err (!%p780_p7)
}
  0x24   : > { %s784_s17 = scalar_lea.vmem %s210_s7, 512  ;;  %p792_p1 = scmp.lt.s32.totalorder %s210_s7, %s210_s7 }
  0x25   : > { %p785_p9 = scmp.ne.s32.totalorder %s210_s7, %s784_s17  ;;  %p793_p4 = scmp.lt.s32.totalorder %s784_s17, %s784_s17 }
  0x27   : > { %p787_p10 = pnand %p785_p9, %p773_p13  ;;  %p794_p8 = por %p793_p4, %p792_p1 }
  0x29   : > { %p788_p6 = pneg %p787_p10 }
  0x2b   : > { %p795_p2 = pnand %p794_p8, %p788_p6 }
  0x2d   : > { %798 = shalt.err (!%p795_p2)
}
  0x2e   : > { %s950_s24 = smov 128   ;;  %s951_s25 = smov 8  }
  0x2f   : > { %699 = dma.hbm_to_vmem [thread:$0]  (!%p1053_p11), %s1246_s1, 512, %s210_s7, [#allocation6], %s950_s24, %s950_s24, %s951_s25  }
  0x30   : > { %p40_p1 = scmp.ge.s32.totalorder %s38_s9, 2  ;;  %s47_s11 = sadd.s32 1, %s935_s20 }
  0x31   : > { %p54_p2 = scmp.ne.s32.totalorder %s935_s20, %s931_s19  ;;  %p55_p4 = scmp.eq.s32.totalorder %s947_s23, 0 }
  0x32   : > { %s1278_s9 = smov (%p40_p1, %s38_s9), 0  ;;  %p1263_p8 = scmp.ne.s32.totalorder %s1257_s27, 0 }
  0x33   : > { %p1080_p6 = por %p55_p4, %p54_p2  ;;  %s42_s8 = ssub.s32 %s943_s22, %s1278_s9 }
  0x34   : > { %p1086_p10 = por %p1263_p8, %p54_p2  ;;  %p712_p12 = scmp.lt.s32.totalorder %s947_s23, 2 }
  0x35   : > { %p45_p11 = scmp.eq.s32.totalorder %s42_s8, 0  ;;  %s226_s7 = sand.u32 1, %s935_s20  }
  0x36   : > { %s646_s14 = sshll.u32 %s226_s7, 3  ;;  %s647_s16 = sshll.u32 %s943_s22, 7 }
  0x37   : > { %s1095_s15 = scalar_select %p45_p11, %s935_s20, %s47_s11  }
  0x38   : > { %s1265_s0 = sld [smem:[#allocation14_spill]]  ;;  %s230_s27 = scalar_lea.vmem [#allocation2], %s646_s14 }
  0x39   : > { %s238_s6 = sshll.u32 %s230_s27, 4  ;;  %p1107_p13 = pnand %p712_p12, %p1080_p6  ;;  %s1103_s6 = int_to_ptr.vmem [resolvable:$true] %s238_s6 }
  0x3a   : > { %s227_s11 = scalar_lea.sflag [#allocation3], %s226_s7 }
  0x3b   : > { %p801_p3 = pneg %p1107_p13 }
  0x3e   : > { %s1101_s25 = scalar_lea.hbm %s1265_s0, %s647_s16  ;;  %s804_s17 = scalar_lea.hbm %s1265_s0, 256 }
  0x3f   : > { %s799_s8 = scalar_lea.hbm %s1101_s25, 128  ;;  %p805_p9 = scmp.lt.u32.totalorder %s1101_s25, %s1265_s0 }
  0x40   : > { %p800_p0 = scmp.ne.s32.totalorder %s1101_s25, %s799_s8  ;;  %p806_p1 = scmp.lt.u32.totalorder %s804_s17, %s799_s8 }
  0x41   : > { %p808_p4 = scmp.lt.u32.totalorder %s799_s8, %s1101_s25 }
  0x42   : > { %p802_p5 = pnand %p801_p3, %p800_p0  ;;  %p807_p2 = por %p806_p1, %p805_p9 }
  0x44   : > { %p803_p7 = pneg %p802_p5  ;;  %p809_p6 = por %p808_p4, %p807_p2 }
  0x46   : > { %p810_p8 = pnand %p809_p6, %p803_p7 }
  0x48   : > { %813 = shalt.err (!%p810_p8)
}
  0x49   : > { %s814_s7 = scalar_lea.vmem %s1103_s6, 128  ;;  %s952_s27 = smov [#allocation2]  }
  0x4a   : > { %p815_p12 = scmp.ne.s32.totalorder %s1103_s6, %s814_s7  ;;  %s819_s14 = sshll.u32 %s952_s27, 4  ;;  %s820_s14 = int_to_ptr.vmem [resolvable:$false] %s819_s14 }
  0x4b   : > { %s821_s16 = scalar_lea.vmem %s820_s14, 256  ;;  %p822_p5 = scmp.lt.s32.totalorder %s1103_s6, %s820_s14 }
  0x4c   : > { %p817_p11 = pnand %p815_p12, %p801_p3  ;;  %p823_p9 = scmp.lt.s32.totalorder %s821_s16, %s814_s7 }
  0x4e   : > { %p818_p0 = pneg %p817_p11  ;;  %p824_p1 = por %p823_p9, %p822_p5 }
  0x50   : > { %p825_p2 = pnand %p824_p1, %p818_p0 }
  0x52   : > { %828 = shalt.err (!%p825_p2)
}
  0x53   : > { %703 = dma.hbm_to_vmem [thread:$0]  (!%p1107_p13), %s1101_s25, 128, %s1103_s6, %s227_s11  }
  0x54   : > { %p1267_p7 = scmp.ne.s32.totalorder %s1260_s30, 0 }
  0x55   : > { %s1139_s8 = sand.u32 (!%p1267_p7), 1, %s931_s19   ;;  %p1268_p3 = scmp.ne.s32.totalorder (!%p1267_p7), %s1258_s28, 0 }
  0x56   : > { %247 = sbr.rel (%p1267_p7) target bundleno = 579 (0x243), region = 32  ;;  %s1142_s17 = sshll.u32 (!%p1267_p7), %s1139_s8, 3 }
  0x57   : > { %s250_s12 = scalar_lea.sflag (!%p1267_p7), [#allocation3], %s1139_s8  ;;  %s253_s24 = scalar_lea.vmem (!%p1267_p7), [#allocation2], %s1142_s17 }
  0x5d   : > { %910 = dma.done.wait (%p1268_p3), %s250_s12, 128  }
  0x5e   : > { %912 = vsyncadd (%p1268_p3), %s250_s12, 4294967168  ;;  %p1269_p13 = scmp.ne.s32.totalorder %s1256_s26, 0 }
  0x60   : > { %914 = dma.done.wait (%p1269_p13), [#allocation6], 512  }
  0x61   : > { %916 = vsyncadd (%p1269_p13), [#allocation6], 4294966784  ;;  %v953_v0 = vmov 0.0|0.0   ;;  %vm954_vm0 = vmmov 0   ;;  %v955_v1 = vmov 0.0   ;;  %v306_v2 = vld [vmem:[#allocation5] sm:$0xff] }
  0x62   : > { %680 = vmatprep.subr.bf16.mxu0 %v953_v0  ;;  %677 = vmatprep.mubr.msk.f32.mxu0 %vm954_vm0, %v955_v1  ;;  %v307_v3 = vld [vmem:[#allocation5 + $0x8] sm:$0xff]  ;;  %v308_v4 = vld [vmem:[#allocation5 + $0x10] sm:$0xff]  ;;  %v309_v6 = vld [vmem:[#allocation5 + $0x18] sm:$0xff]  ;;  %vm317_vm1 = vcmask 261120   ;;  %s956_s30 = smov 96   ;;  %s279_s25 = scalar_lea.vmem [#allocation7], %s1142_s17 }
  0x63   : > { %v681_v5 = vpack.c.bf16 %v307_v3, %v306_v2  ;;  %v684_v7 = vpack.c.bf16 %v309_v6, %v308_v4  ;;  %v305_v8 = vld [vmem:[%s253_s24] sm:$0xff]  ;;  %s957_s6 = smov 64   ;;  %s296_s10 = scalar_lea.vmem [#allocation8], %s1142_s17 }
  0x64   : > { %v655_v9 = vld [vmem:[%s1247_s2] ss:$0 sm:$0xff]  ;;  %s659_s11 = sshll.u32 %s939_s21, 7  ;;  %s465_s7 = sshll.u32 %s279_s25, 4  ;;  %s466_s7 = int_to_ptr.vmem [resolvable:$true] %s465_s7 }
  0x65   : > { %682 = vmatpush3.bf16.msra.mxu0 %v681_v5  ;;  %s1170_s16 = scalar_lea.hbm %s1248_s3, %s659_s11  ;;  %s438_s12 = scalar_lea.sflag [#allocation4], %s1139_s8 }
  0x66   : > { %683 = vmatprep.subr.bf16.mxu0 %v953_v0  ;;  %s829_s24 = scalar_lea.vmem %s466_s7, 128  ;;  %s958_s26 = smov [#allocation7]  }
  0x67   : > { %p830_p4 = scmp.ne.s32.totalorder %s466_s7, %s829_s24  ;;  %s833_s28 = sshll.u32 %s958_s26, 4  ;;  %s834_s28 = int_to_ptr.vmem [resolvable:$false] %s833_s28 }
  0x68   : > { %p836_p12 = scmp.lt.s32.totalorder %s466_s7, %s834_s28 }
  0x69   : > { %685 = vmatpush3.bf16.msra.mxu0 %v684_v7  ;;  %p831_p6 = pnand %p830_p4, %p1086_p10 }
  0x6b   : > { %p832_p8 = pneg %p831_p6 }
  0x6c   : > { %678 = vmatmul.mubr.msk.f32.vlgmr.msra.gmra.mrb[0].mxu0 %vm317_vm1, %v305_v8 }
 0x13f   : > { %v387_v10 = vpop.f32.mrb[0].mxu0 }
 0x140   : > { %v388_v11 = vadd.f32 %v655_v9, %v387_v10  ;;  %v679_v12 = vpop.f32.mrb[1].mxu0 }
 0x142   : > { %393 = vrot.lane.b32.xlu0 %v388_v11, %s956_s30  ;;  %391 = vst.msk [vmem:[%s279_s25] sm:$0xff] %vm317_vm1, %v388_v11  ;;  %s835_s30 = scalar_lea.vmem %s834_s28, 256 }
 0x143   : > { %p837_p11 = scmp.lt.s32.totalorder %s835_s30, %s829_s24 }
 0x145   : > { %p838_p0 = por %p837_p11, %p836_p12 }
 0x146   : > { %433 = vrot.lane.b32.xlu0 %v388_v11, %s957_s6 }
 0x147   : > { %p839_p5 = pnand %p838_p0, %p832_p8 }
 0x1b4   : > { %v394_v13 = vpop.permute.xlu0 %393 }
 0x1b5   : > { %396 = vxpose.xlu1.b32.start.end [1/1] (short) (narrow) %v394_v13, 32 }
 0x1b8   : > { %v434_v14 = vpop.permute.xlu0 %433 }
 0x1b9   : > { %436 = vst.msk [vmem:[%s296_s10] sm:$0xff] %vm317_vm1, %v434_v14 }
 0x1ba   : > { %842 = shalt.err (!%p839_p5)
}
 0x1bb   : > { %s843_s25 = scalar_lea.hbm %s1170_s16, 128  ;;  %s847_s14 = scalar_lea.hbm %s1248_s3, 256 }
 0x1bc   : > { %p844_p9 = scmp.ne.s32.totalorder %s1170_s16, %s843_s25  ;;  %p848_p7 = scmp.lt.u32.totalorder %s1170_s16, %s1248_s3 }
 0x1bd   : > { %p849_p3 = scmp.lt.u32.totalorder %s847_s14, %s843_s25  ;;  %p851_p4 = scmp.lt.u32.totalorder %s843_s25, %s1170_s16 }
 0x1be   : > { %p845_p1 = pnand %p844_p9, %p1086_p10 }
 0x1bf   : > { %p850_p13 = por %p849_p3, %p848_p7 }
 0x1c0   : > { %p846_p2 = pneg %p845_p1 }
 0x1c1   : > { %p852_p6 = por %p851_p4, %p850_p13 }
 0x1c3   : > { %p853_p8 = pnand %p852_p6, %p846_p2 }
 0x1c5   : > { %856 = shalt.err (!%p853_p8)
}
 0x1c6   : > { %692 = dma.vmem_to_hbm [thread:$0]  (%p1086_p10), %s466_s7, 128, %s1170_s16, %s438_s12  }
 0x1c7   : > { %s1195_s6 = scalar_lea.hbm %s1250_s5, %s659_s11  ;;  %s482_s27 = sshll.u32 %s296_s10, 4  ;;  %s483_s27 = int_to_ptr.vmem [resolvable:$true] %s482_s27 }
 0x1c8   : > { %s451_s25 = scalar_lea.sflag [#allocation9], %s1139_s8  ;;  %s857_s14 = scalar_lea.vmem %s483_s27, 128 }
 0x1c9   : > { %p858_p12 = scmp.ne.s32.totalorder %s483_s27, %s857_s14  ;;  %s959_s26 = smov [#allocation8]  }
 0x1ca   : > { %s861_s28 = sshll.u32 %s959_s26, 4  ;;  %s862_s28 = int_to_ptr.vmem [resolvable:$false] %s861_s28 }
 0x1cb   : > { %p859_p11 = pnand %p858_p12, %p1086_p10  ;;  %s863_s0 = scalar_lea.vmem %s862_s28, 256 }
 0x1cc   : > { %p864_p5 = scmp.lt.s32.totalorder %s483_s27, %s862_s28  ;;  %p865_p9 = scmp.lt.s32.totalorder %s863_s0, %s857_s14 }
 0x1cd   : > { %p860_p0 = pneg %p859_p11 }
 0x1ce   : > { %p866_p1 = por %p865_p9, %p864_p5 }
 0x1d0   : > { %p867_p2 = pnand %p866_p1, %p860_p0 }
 0x1d2   : > { %870 = shalt.err (!%p867_p2)
}
 0x1d3   : > { %s871_s8 = scalar_lea.hbm %s1195_s6, 128  ;;  %s875_s11 = scalar_lea.hbm %s1250_s5, 256 }
 0x1d4   : > { %p872_p7 = scmp.ne.s32.totalorder %s1195_s6, %s871_s8  ;;  %p876_p4 = scmp.lt.u32.totalorder %s1195_s6, %s1250_s5 }
 0x1d5   : > { %p877_p6 = scmp.lt.u32.totalorder %s875_s11, %s871_s8  ;;  %p879_p12 = scmp.lt.u32.totalorder %s871_s8, %s1195_s6 }
 0x1d6   : > { %p873_p3 = pnand %p872_p7, %p1086_p10 }
 0x1d7   : > { %p878_p8 = por %p877_p6, %p876_p4 }
 0x1d8   : > { %p874_p13 = pneg %p873_p3 }
 0x1d9   : > { %p880_p11 = por %p879_p12, %p878_p8 }
 0x1db   : > { %p881_p0 = pnand %p880_p11, %p874_p13 }
 0x1dd   : > { %884 = shalt.err (!%p881_p0)
}
 0x1de   : > { %693 = dma.vmem_to_hbm [thread:$0]  (%p1086_p10), %s483_s27, 128, %s1195_s6, %s451_s25   ;;  %vm428_vm2 = vcmask 64512  }
 0x1df   : > { %p297_p5 = scmp.lt.s32.totalorder %s939_s21, 1 }
 0x1e1   : > { %s1280_s21 = smov (!%p297_p5, %s939_s21), 1 }
 0x1e2   : > { %s663_s0 = sshll.u32 %s1280_s21, 5 }
 0x1e3   : > { %s304_s30 = scalar_lea.vmem %s1249_s4, %s663_s0 }
 0x235   : > { %v412_v15 = vpop.trf.xlu1 }
 0x236   : > { %429 = vst.msk [vmem:[%s304_s30] sm:$0xff] %vm428_vm2, %v412_v15 }
 0x239   : > { %v413_v16 = vpop.trf.xlu1 }
 0x23a   : > { %430 = vst.msk [vmem:[%s304_s30 + $0x8] sm:$0xff] %vm428_vm2, %v413_v16 }
 0x23d   : > { %v414_v17 = vpop.trf.xlu1 }
 0x23e   : > { %431 = vst.msk [vmem:[%s304_s30 + $0x10] sm:$0xff] %vm428_vm2, %v414_v17 }
 0x241   : > { %v415_v18 = vpop.trf.xlu1 }
 0x242   : > { %432 = vst.msk [vmem:[%s304_s30 + $0x18] sm:$0xff] %vm428_vm2, %v415_v18 }
 0x243 PF: > { %s494_s13 = sand.u32 1, %s927_s18   ;;  %p1270_p10 = scmp.ne.s32.totalorder %s1259_s29, 0 }
 0x244   : > { %p1271_p9 = scmp.ge.s32.totalorder %s947_s23, 2  ;;  %s495_s21 = scalar_lea.sflag [#allocation4], %s494_s13 }
 0x246   : > { %p705_p1 = pnand %p1271_p9, %p1270_p10 }
 0x248   : > { %918 = dma.done.wait (!%p705_p1), %s495_s21, 128  }
 0x249   : > { %920 = vsyncadd (!%p705_p1), %s495_s21, 4294967168  ;;  %s515_s6 = scalar_lea.sflag [#allocation9], %s494_s13 }
 0x24a   : > { %922 = dma.done.wait (!%p705_p1), %s515_s6, 128  }
 0x24b   : > { %924 = vsyncadd (!%p705_p1), %s515_s6, 4294967168  ;;  %s26_s23 = sadd.s32 1, %s947_s23   ;;  %s1272_s18 = smov %s931_s19 }
 0x24c   : > { %p23_p2 = scmp.ge.s32.totalorder %s26_s23, 4   ;;  %s1273_s19 = smov %s935_s20 }
 0x24d   : > { %s1274_s20 = smov %s1095_s15  ;;  %s1275_s21 = smov %s943_s22 }
 0x24e   : > { %s1276_s22 = smov %s1278_s9  ;;  %25 = sbr.rel (!%p23_p2) target bundleno = 11 (0xb), region = 110 }
 0x255   :  { %520 = vsyncpa [#allocation3], 1 }
 0x256   :  { %522 = vsyncpa [#allocation3 + $0x1], 1 }
 0x257   :  { %523 = vsyncpa [#allocation6], 1 }
 0x258   :  { %524 = vsyncpa [#allocation4], 1 }
 0x259   :  { %526 = vsyncpa [#allocation4 + $0x1], 1 }
 0x25a   :  { %527 = vsyncpa [#allocation9], 1 }
 0x25b   :  { %529 = vsyncpa [#allocation9 + $0x1], 1 }

</bundles_post_ra>
